<compile_context>
chip_gen: v7x
topology: tpu7x:2x2x1
jax: 0.10.0
libtpu: 0.0.40
codegen_flags: <defaults>
</compile_context>

<pallas_src>
import functools
import math

import jax
import jax.numpy as jnp
import numpy as np
from jax import lax
from jax.experimental import pallas as pl
from jax.experimental.pallas import tpu as pltpu

LN_EPS = 1e-5


def _layernorm(x, gamma):
    # F.layer_norm over the last dim, beta = 0 (registered buffer of zeros).
    mu = jnp.mean(x, axis=-1, keepdims=True)
    var = jnp.mean((x - mu) ** 2, axis=-1, keepdims=True)
    return (x - mu) * lax.rsqrt(var + LN_EPS) * gamma


def _erf(x):
    # Abramowitz & Stegun 7.1.26 polynomial (|err| < 1.5e-7): exp/abs/select only,
    # all of which lower cleanly in Mosaic.
    p = 0.3275911
    a1, a2, a3, a4, a5 = (0.254829592, -0.284496736, 1.421413741,
                          -1.453152027, 1.061405429)
    ax = jnp.abs(x)
    t = 1.0 / (1.0 + p * ax)
    poly = ((((a5 * t + a4) * t + a3) * t + a2) * t + a1) * t
    y = 1.0 - poly * jnp.exp(-ax * ax)
    return jnp.where(x >= 0, y, -y)


def _gelu_exact(x):
    # nn.GELU() default = exact erf formulation.
    return 0.5 * x * (1.0 + _erf(x * (1.0 / math.sqrt(2.0))))


# ---------------------------------------------------------------------------
# Fused kernel: pos-add -> depth x (ctx-LN, fused KV proj, attention, per-head
# out proj, post-LN) -> mean over seq -> Linear -> GELU -> Linear.
# Grid iterates batch tiles; x stays resident in VMEM for the whole forward.
# ---------------------------------------------------------------------------
def _fused_pooler_kernel(x_ref, pos_ref, q_ref, gctx_ref, wkv_ref, wo_ref,
                         gpost_ref, w1_ref, b1_ref, w2_ref, b2_ref, o_ref, *,
                         heads, dim_head, exact_softmax):
    f32, bf16 = jnp.float32, jnp.bfloat16
    Bt, S, D = x_ref.shape
    H, Dh = heads, dim_head
    depth = q_ref.shape[0]

    # Fused positional-encoding add (pos broadcasts over the batch tile).
    x2d = (x_ref[...] + pos_ref[...]).reshape(Bt * S, D)              # f32

    def layer(l, x2d):
        # ---- context path: LayerNorm + fused K/V projection ---------------
        ctx = _layernorm(x2d, gctx_ref[l]).astype(bf16)               # (Bt*S, D)
        kv = jnp.dot(ctx, wkv_ref[l], preferred_element_type=f32)     # (Bt*S, 2*Dh)
        k2d = kv[:, :Dh].astype(bf16)
        v3 = kv[:, Dh:].reshape(Bt, S, Dh).astype(bf16)

        # ---- scores: ONE big matmul, M = Bt*S keys, N = H*S queries -------
        # q_ref[l] holds LayerNorm(queries) @ Wq * scale, pre-transposed to
        # (Dh, H*S) with column index h*S + i (batch-invariant, no broadcast).
        simT = jnp.dot(k2d, q_ref[l], preferred_element_type=f32)     # (Bt*S, H*S)
        sim = jnp.swapaxes(simT.reshape(Bt, S, H * S), 1, 2)          # (Bt, H*S, S)

        # ---- softmax over keys (f32) ---------------------------------------
        sim = sim - jnp.max(sim, axis=-1, keepdims=True)
        p = jnp.exp(sim)
        denom = jnp.sum(p, axis=-1, keepdims=True)
        if exact_softmax:
            attn = p / denom
        else:
            attn = p * pl.reciprocal(denom, approx=True)              # EUP slot

        # ---- attention output (batched, contraction over keys) -------------
        out = jnp.einsum("bqk,bkd->bqd", attn.astype(bf16), v3,
                         preferred_element_type=f32)                  # (Bt, H*S, Dh)

        # ---- output projection: per-head accumulation (no '(h d)' merge) ---
        y = None
        for h in range(H):                                            # static unroll
            oh = out[:, h * S:(h + 1) * S, :].reshape(Bt * S, Dh).astype(bf16)
            wo_h = wo_ref[l * H + h]                                  # (Dh, D) bf16
            t = jnp.dot(oh, wo_h, preferred_element_type=f32)         # (Bt*S, D)
            y = t if y is None else y + t

        return _layernorm(y, gpost_ref[l])                            # post-LN (f32)

    x2d = lax.fori_loop(0, depth, layer, x2d)

    # ---- mean over sequence + Linear -> GELU -> Linear ----------------------
    pooled = jnp.mean(x2d.reshape(Bt, S, D), axis=1)                  # (Bt, D) f32
    h = jnp.dot(pooled.astype(bf16), w1_ref[...],
                preferred_element_type=f32) + b1_ref[...]
    h = _gelu_exact(h)
    pred = jnp.dot(h.astype(bf16), w2_ref[...],
                   preferred_element_type=f32) + b2_ref[...]
    o_ref[...] = pred                                                 # (Bt, P_pad)


# ---------------------------------------------------------------------------
# Wrapper-side weight preparation: hoist the batch-invariant query path and
# stack per-layer weights along a leading depth axis (bf16 for matmul operands).
# ---------------------------------------------------------------------------
def _prepare_inputs(params, *, heads, dim_head):
    bf16 = jnp.bfloat16
    scale = dim_head ** -0.5
    qs, gctx, wkv, wo, gpost = [], [], [], [], []
    for lyr in params["layers"]:
        S = lyr["queries"].shape[0]
        xq = _layernorm(lyr["queries"], lyr["g_norm"])      # self.norm(queries)
        qfull = (xq @ lyr["wq"]) * scale                    # (S, H*Dh), scale folded
        # -> (Dh, H*S) with column index h*S + i (kernel computes K @ Qpre).
        q_l = qfull.reshape(S, heads, dim_head).transpose(2, 1, 0)
        qs.append(q_l.reshape(dim_head, heads * S))
        gctx.append(lyr["g_ctx"])
        gpost.append(lyr["g_post"])
        wkv.append(lyr["wkv"])                              # fused (D, 2*Dh)
        wo.append(lyr["wo"].reshape(heads, dim_head, -1))   # (H, Dh, D)
    depth = len(params["layers"])
    D = params["layers"][0]["wo"].shape[-1]
    wo_flat = jnp.stack(wo).reshape(depth * heads, dim_head, D)
    return (jnp.stack(qs).astype(bf16), jnp.stack(gctx),
            jnp.stack(wkv).astype(bf16), wo_flat.astype(bf16), jnp.stack(gpost))


def cross_attentional_pooler(x, params, *, heads, dim_head, block_b=None,
                             exact_softmax=False):
    x = x.astype(jnp.float32)
    B, S, D = x.shape
    depth = len(params["layers"])
    pr = params["proj"]
    Hd = pr["w1"].shape[1]
    P = pr["w2"].shape[1]
    P_pad = pl.cdiv(P, 128) * 128          # lane-dense output store
    bf16 = jnp.bfloat16

    if block_b is None:
        # v7x has 2 TensorCores/chip -> give the "parallel" grid >= 2 steps, but
        # only if the half-batch keeps an 8-aligned output block.  On the
        # single-TC v5e/v6e a batch split is pure per-step overhead.
        kind = jax.devices()[0].device_kind.lower()
        if "v7" in kind and B % 2 == 0 and (B // 2) % 8 == 0:
            block_b = B // 2
        else:
            block_b = B
    assert B % block_b == 0
    nb = B // block_b

    q_pre, g_ctx, wkv, wo, g_post = _prepare_inputs(
        params, heads=heads, dim_head=dim_head)
    pos = params["pos_encoding"].astype(jnp.float32)
    w1 = pr["w1"].astype(bf16)
    b1 = pr["b1"].astype(jnp.float32)
    w2 = jnp.pad(pr["w2"], ((0, 0), (0, P_pad - P))).astype(bf16)
    b2 = jnp.pad(pr["b2"], ((0, 0), (0, P_pad - P))).astype(jnp.float32)

    kernel = functools.partial(_fused_pooler_kernel, heads=heads,
                               dim_head=dim_head, exact_softmax=exact_softmax)

    # (operand, block_shape, index_map) triples; everything except x / out is
    # constant across the batch grid.
    ops = [
        (x,      (block_b, S, D),                 lambda b: (b, 0, 0)),
        (pos,    (1, S, D),                       lambda b: (0, 0, 0)),
        (q_pre,  (depth, dim_head, heads * S),    lambda b: (0, 0, 0)),
        (g_ctx,  (depth, 1, D),                   lambda b: (0, 0, 0)),
        (wkv,    (depth, D, 2 * dim_head),        lambda b: (0, 0, 0)),
        (wo,     (depth * heads, dim_head, D),    lambda b: (0, 0, 0)),
        (g_post, (depth, 1, D),                   lambda b: (0, 0, 0)),
        (w1,     (D, Hd),                         lambda b: (0, 0)),
        (b1,     (1, Hd),                         lambda b: (0, 0)),
        (w2,     (Hd, P_pad),                     lambda b: (0, 0)),
        (b2,     (1, P_pad),                      lambda b: (0, 0)),
    ]
    operands = [a for a, _, _ in ops]
    in_specs = [pl.BlockSpec(shape, imap) for _, shape, imap in ops]
    out_spec = pl.BlockSpec((block_b, P_pad), lambda b: (b, 0))

    # Explicit VMEM budget: double-buffered blocks + generous slack for the
    # in-kernel intermediates; clamped well under v7x's 64 MiB physical VMEM.
    block_bytes = sum(int(np.prod(shape)) * a.dtype.itemsize
                      for a, shape, _ in ops)
    block_bytes += block_b * P_pad * 4
    vmem_limit = int(min(48 * 2**20, max(32 * 2**20, 4 * block_bytes)))

    out = pl.pallas_call(
        kernel,
        out_shape=jax.ShapeDtypeStruct((B, P_pad), jnp.float32),
        grid=(nb,),
        in_specs=in_specs,
        out_specs=out_spec,
        compiler_params=pltpu.CompilerParams(
            dimension_semantics=("parallel",),
            vmem_limit_bytes=vmem_limit),
    )(*operands)
    return out[:, :P]


# ---------------------------------------------------------------------------
# Parameter init (deterministic, f32 master copies).
# ---------------------------------------------------------------------------
def init_params(key, *, dim, seq_len, heads, dim_head, depth, proj_dim):
    inner = heads * dim_head
    hid = (dim + proj_dim) // 2
    keys = jax.random.split(key, 4 + depth * 4)
    params = {
        "pos_encoding": jax.random.normal(keys[0], (1, seq_len, dim), jnp.float32),
        "layers": [],
        "proj": {
            "w1": jax.random.normal(keys[1], (dim, hid), jnp.float32) * 0.05,
            "b1": jnp.zeros((1, hid), jnp.float32),
            "w2": jax.random.normal(keys[2], (hid, proj_dim), jnp.float32) * 0.05,
            "b2": jnp.zeros((1, proj_dim), jnp.float32),
        },
    }
    for i in range(depth):
        k = keys[4 + 4 * i: 8 + 4 * i]
        params["layers"].append({
            "queries": jax.random.normal(k[0], (seq_len, dim), jnp.float32),
            "g_norm": jnp.ones((1, dim), jnp.float32),   # LayerNorm gammas init = 1
            "g_ctx": jnp.ones((1, dim), jnp.float32),
            "g_post": jnp.ones((1, dim), jnp.float32),
            "wq": jax.random.normal(k[1], (dim, inner), jnp.float32) * 0.05,
            "wkv": jax.random.normal(k[2], (dim, 2 * dim_head), jnp.float32) * 0.05,
            "wo": jax.random.normal(k[3], (inner, dim), jnp.float32) * 0.05,
        })
    return params


# ---------------------------------------------------------------------------
# Pure-JAX f32 reference (mirrors the PyTorch forward) for verification.
# ---------------------------------------------------------------------------
def reference(x, params, *, heads, dim_head):
    x = x.astype(jnp.float32) + params["pos_encoding"]
    scale = dim_head ** -0.5
    for lyr in params["layers"]:
        B, S, D = x.shape
        queries = jnp.broadcast_to(lyr["queries"], (B, S, D))
        xq = _layernorm(queries, lyr["g_norm"])
        ctx = _layernorm(x, lyr["g_ctx"])
        q = (xq @ lyr["wq"]) * scale                        # (B, S, H*Dh)
        q = q.reshape(B, S, heads, dim_head).transpose(0, 2, 1, 3)
        kv = ctx @ lyr["wkv"]
        k, v = kv[..., :dim_head], kv[..., dim_head:]
        sim = jnp.einsum("bhid,bjd->bhij", q, k)
        sim = sim - jnp.max(sim, axis=-1, keepdims=True)
        attn = jax.nn.softmax(sim, axis=-1)
        out = jnp.einsum("bhij,bjd->bhid", attn, v)
        out = out.transpose(0, 2, 1, 3).reshape(B, S, heads * dim_head)
        out = out @ lyr["wo"]
        x = _layernorm(out, lyr["g_post"])
    v = jnp.mean(x, axis=1)
    pr = params["proj"]
    h = jax.nn.gelu(v @ pr["w1"] + pr["b1"], approximate=False)
    return h @ pr["w2"] + pr["b2"]


if __name__ == "__main__":
    # Small, module-consistent shapes (depth=2 exercises the in-kernel layer loop).
    B, S, D = 2, 8, 32          # batch, seq_len, dim
    HEADS, DIM_HEAD = 4, 16
    DEPTH, PROJ_DIM = 2, 16

    key = jax.random.PRNGKey(0)
    kx, kp = jax.random.split(key)
    x = jax.random.normal(kx, (B, S, D), jnp.float32)
    params = init_params(kp, dim=D, seq_len=S, heads=HEADS, dim_head=DIM_HEAD,
                         depth=DEPTH, proj_dim=PROJ_DIM)

    out = cross_attentional_pooler(x, params, heads=HEADS, dim_head=DIM_HEAD)
    out = jax.block_until_ready(out)

    ref = reference(x, params, heads=HEADS, dim_head=DIM_HEAD)
    # bf16 matmul operands (f32 accumulation) + approx-reciprocal softmax drift
    # slightly from the all-f32 reference -> tolerance loosened accordingly.
    np.testing.assert_allclose(np.asarray(out), np.asarray(ref),
                               rtol=3e-2, atol=1e-2)

    print("KERNEL_OK")
</pallas_src>

<mosaic_0001>
module attributes {stable_mosaic.version = 11 : i64} {
  func.func @_fused_pooler_kernel(%arg0: i32, %arg1: memref<2x8x32xf32, #tpu.memory_space<vmem>>, %arg2: memref<1x8x32xf32, #tpu.memory_space<vmem>>, %arg3: memref<2x16x32xbf16, #tpu.memory_space<vmem>>, %arg4: memref<2x1x32xf32, #tpu.memory_space<vmem>>, %arg5: memref<2x32x32xbf16, #tpu.memory_space<vmem>>, %arg6: memref<8x16x32xbf16, #tpu.memory_space<vmem>>, %arg7: memref<2x1x32xf32, #tpu.memory_space<vmem>>, %arg8: memref<32x24xbf16, #tpu.memory_space<vmem>>, %arg9: memref<1x24xf32, #tpu.memory_space<vmem>>, %arg10: memref<24x128xbf16, #tpu.memory_space<vmem>>, %arg11: memref<1x128xf32, #tpu.memory_space<vmem>>, %arg12: memref<2x128xf32, #tpu.memory_space<vmem>>) attributes {dimension_semantics = [#tpu.dimension_semantics<parallel>], iteration_bounds = array<i64: 1>, scalar_prefetch = 0 : i64, scratch_operands = 0 : i64, tpu.core_type = #tpu.core_type<tc>, window_params = [{transform_indices = @transform_0, window_bounds = array<i64: 2, 8, 32>}, {pipeline_mode = #tpu.pipeline_mode<synchronous>, transform_indices = @transform_1, window_bounds = array<i64: 1, 8, 32>}, {pipeline_mode = #tpu.pipeline_mode<synchronous>, transform_indices = @transform_2, window_bounds = array<i64: 2, 16, 32>}, {pipeline_mode = #tpu.pipeline_mode<synchronous>, transform_indices = @transform_3, window_bounds = array<i64: 2, 1, 32>}, {pipeline_mode = #tpu.pipeline_mode<synchronous>, transform_indices = @transform_4, window_bounds = array<i64: 2, 32, 32>}, {pipeline_mode = #tpu.pipeline_mode<synchronous>, transform_indices = @transform_5, window_bounds = array<i64: 8, 16, 32>}, {pipeline_mode = #tpu.pipeline_mode<synchronous>, transform_indices = @transform_6, window_bounds = array<i64: 2, 1, 32>}, {pipeline_mode = #tpu.pipeline_mode<synchronous>, transform_indices = @transform_7, window_bounds = array<i64: 32, 24>}, {pipeline_mode = #tpu.pipeline_mode<synchronous>, transform_indices = @transform_8, window_bounds = array<i64: 1, 24>}, {pipeline_mode = #tpu.pipeline_mode<synchronous>, transform_indices = @transform_9, window_bounds = array<i64: 24, 128>}, {pipeline_mode = #tpu.pipeline_mode<synchronous>, transform_indices = @transform_10, window_bounds = array<i64: 1, 128>}, {transform_indices = @transform_11, window_bounds = array<i64: 2, 128>}]} {
    %c0 = arith.constant 0 : index
    %c0_0 = arith.constant 0 : index
    %c0_1 = arith.constant 0 : index
    %0 = vector.load %arg1[%c0, %c0_0, %c0_1] : memref<2x8x32xf32, #tpu.memory_space<vmem>>, vector<2x8x32xf32>
    %c0_2 = arith.constant 0 : index
    %c0_3 = arith.constant 0 : index
    %c0_4 = arith.constant 0 : index
    %1 = vector.load %arg2[%c0_2, %c0_3, %c0_4] : memref<1x8x32xf32, #tpu.memory_space<vmem>>, vector<1x8x32xf32>
    %2 = vector.broadcast %1 : vector<1x8x32xf32> to vector<2x8x32xf32>
    %3 = arith.addf %0, %2 : vector<2x8x32xf32>
    %4 = vector.shape_cast %3 : vector<2x8x32xf32> to vector<16x32xf32>
    %c0_i32 = arith.constant 0 : i32
    %c2_i32 = arith.constant 2 : i32
    %5 = arith.addi %c0_i32, %c2_i32 : i32
    %c1_i32 = arith.constant 1 : i32
    %6 = scf.for %arg13 = %c0_i32 to %5 step %c1_i32 iter_args(%arg14 = %4) -> (vector<16x32xf32>)  : i32 {
      %64 = arith.index_cast %arg13 : i32 to index
      %c0_34 = arith.constant 0 : index
      %c0_35 = arith.constant 0 : index
      %65 = vector.load %arg4[%64, %c0_34, %c0_35] : memref<2x1x32xf32, #tpu.memory_space<vmem>>, vector<1x1x32xf32>
      %66 = vector.shape_cast %65 : vector<1x1x32xf32> to vector<1x32xf32>
      %cst_36 = arith.constant dense<0.000000e+00> : vector<16xf32>
      %67 = vector.multi_reduction <add>, %arg14, %cst_36 [1] : vector<16x32xf32> to vector<16xf32>
      %68 = vector.shape_cast %67 : vector<16xf32> to vector<16x1xf32>
      %cst_37 = arith.constant 3.200000e+01 : f32
      %69 = vector.broadcast %cst_37 : f32 to vector<16x1xf32>
      %70 = arith.divf %68, %69 : vector<16x1xf32>
      %71 = vector.broadcast %70 : vector<16x1xf32> to vector<16x32xf32>
      %72 = arith.subf %arg14, %71 : vector<16x32xf32>
      %73 = arith.mulf %72, %72 : vector<16x32xf32>
      %cst_38 = arith.constant dense<0.000000e+00> : vector<16xf32>
      %74 = vector.multi_reduction <add>, %73, %cst_38 [1] : vector<16x32xf32> to vector<16xf32>
      %75 = vector.shape_cast %74 : vector<16xf32> to vector<16x1xf32>
      %cst_39 = arith.constant 3.200000e+01 : f32
      %76 = vector.broadcast %cst_39 : f32 to vector<16x1xf32>
      %77 = arith.divf %75, %76 : vector<16x1xf32>
      %78 = vector.broadcast %70 : vector<16x1xf32> to vector<16x32xf32>
      %79 = arith.subf %arg14, %78 : vector<16x32xf32>
      %cst_40 = arith.constant 9.99999974E-6 : f32
      %80 = vector.broadcast %cst_40 : f32 to vector<16x1xf32>
      %81 = arith.addf %77, %80 : vector<16x1xf32>
      %82 = math.rsqrt %81 : vector<16x1xf32>
      %83 = vector.broadcast %82 : vector<16x1xf32> to vector<16x32xf32>
      %84 = arith.mulf %79, %83 : vector<16x32xf32>
      %85 = vector.broadcast %66 : vector<1x32xf32> to vector<16x32xf32>
      %86 = arith.mulf %84, %85 : vector<16x32xf32>
      %87 = arith.truncf %86 : vector<16x32xf32> to vector<16x32xbf16>
      %88 = arith.index_cast %arg13 : i32 to index
      %c0_41 = arith.constant 0 : index
      %c0_42 = arith.constant 0 : index
      %89 = vector.load %arg5[%88, %c0_41, %c0_42] : memref<2x32x32xbf16, #tpu.memory_space<vmem>>, vector<1x32x32xbf16>
      %90 = vector.shape_cast %89 : vector<1x32x32xbf16> to vector<32x32xbf16>
      %cst_43 = arith.constant dense<0.000000e+00> : vector<16x32xf32>
      %91 = tpu.matmul %87, %90, %cst_43 {dimension_numbers = #tpu.dot_dimension_numbers<[1], [0], [0], [1], [0, 0, 1, 1], [], []>} : vector<16x32xbf16>, vector<32x32xbf16>, vector<16x32xf32> -> vector<16x32xf32>
      %92 = vector.extract_strided_slice %91 {offsets = [0, 0], sizes = [16, 16], strides = [1, 1]} : vector<16x32xf32> to vector<16x16xf32>
      %93 = arith.truncf %92 : vector<16x16xf32> to vector<16x16xbf16>
      %94 = vector.extract_strided_slice %91 {offsets = [0, 16], sizes = [16, 16], strides = [1, 1]} : vector<16x32xf32> to vector<16x16xf32>
      %95 = vector.shape_cast %94 : vector<16x16xf32> to vector<2x8x16xf32>
      %96 = arith.truncf %95 : vector<2x8x16xf32> to vector<2x8x16xbf16>
      %97 = arith.index_cast %arg13 : i32 to index
      %c0_44 = arith.constant 0 : index
      %c0_45 = arith.constant 0 : index
      %98 = vector.load %arg3[%97, %c0_44, %c0_45] : memref<2x16x32xbf16, #tpu.memory_space<vmem>>, vector<1x16x32xbf16>
      %99 = vector.shape_cast %98 : vector<1x16x32xbf16> to vector<16x32xbf16>
      %cst_46 = arith.constant dense<0.000000e+00> : vector<16x32xf32>
      %100 = tpu.matmul %93, %99, %cst_46 {dimension_numbers = #tpu.dot_dimension_numbers<[1], [0], [0], [1], [0, 0, 1, 1], [], []>} : vector<16x16xbf16>, vector<16x32xbf16>, vector<16x32xf32> -> vector<16x32xf32>
      %101 = vector.shape_cast %100 : vector<16x32xf32> to vector<2x8x32xf32>
      %102 = tpu.transpose %101, [0, 2, 1] : vector<2x8x32xf32> -> vector<2x32x8xf32>
      %cst_47 = arith.constant dense<0xFF800000> : vector<2x32xf32>
      %103 = vector.multi_reduction <maximumf>, %102, %cst_47 [2] : vector<2x32x8xf32> to vector<2x32xf32>
      %104 = vector.shape_cast %103 : vector<2x32xf32> to vector<2x32x1xf32>
      %105 = vector.broadcast %104 : vector<2x32x1xf32> to vector<2x32x8xf32>
      %106 = arith.subf %102, %105 : vector<2x32x8xf32>
      %107 = math.exp %106 : vector<2x32x8xf32>
      %cst_48 = arith.constant dense<0.000000e+00> : vector<2x32xf32>
      %108 = vector.multi_reduction <add>, %107, %cst_48 [2] : vector<2x32x8xf32> to vector<2x32xf32>
      %109 = vector.shape_cast %108 : vector<2x32xf32> to vector<2x32x1xf32>
      %110 = tpu.reciprocal %109 {approx = true} : vector<2x32x1xf32> -> vector<2x32x1xf32>
      %111 = vector.broadcast %110 : vector<2x32x1xf32> to vector<2x32x8xf32>
      %112 = arith.mulf %107, %111 : vector<2x32x8xf32>
      %113 = arith.truncf %112 : vector<2x32x8xf32> to vector<2x32x8xbf16>
      "tpu.trace_start"() <{level = 10 : i32, message = "bqk,bkd->bqd"}> : () -> ()
      %cst_49 = arith.constant dense<0.000000e+00> : vector<2x32x16xf32>
      %114 = tpu.matmul %113, %96, %cst_49 {dimension_numbers = #tpu.dot_dimension_numbers<[2], [1], [1], [2], [0, 0, 0, 1, 1, 2], [0], [0]>} : vector<2x32x8xbf16>, vector<2x8x16xbf16>, vector<2x32x16xf32> -> vector<2x32x16xf32>
      "tpu.trace_stop"() : () -> ()
      %115 = vector.extract_strided_slice %114 {offsets = [0, 0, 0], sizes = [2, 8, 16], strides = [1, 1, 1]} : vector<2x32x16xf32> to vector<2x8x16xf32>
      %116 = vector.shape_cast %115 : vector<2x8x16xf32> to vector<16x16xf32>
      %117 = arith.truncf %116 : vector<16x16xf32> to vector<16x16xbf16>
      %c4_i32 = arith.constant 4 : i32
      %118 = arith.muli %arg13, %c4_i32 : i32
      %c0_i32_50 = arith.constant 0 : i32
      %119 = arith.addi %118, %c0_i32_50 : i32
      %120 = arith.index_cast %119 : i32 to index
      %c0_51 = arith.constant 0 : index
      %c0_52 = arith.constant 0 : index
      %121 = vector.load %arg6[%120, %c0_51, %c0_52] : memref<8x16x32xbf16, #tpu.memory_space<vmem>>, vector<1x16x32xbf16>
      %122 = vector.shape_cast %121 : vector<1x16x32xbf16> to vector<16x32xbf16>
      %cst_53 = arith.constant dense<0.000000e+00> : vector<16x32xf32>
      %123 = tpu.matmul %117, %122, %cst_53 {dimension_numbers = #tpu.dot_dimension_numbers<[1], [0], [0], [1], [0, 0, 1, 1], [], []>} : vector<16x16xbf16>, vector<16x32xbf16>, vector<16x32xf32> -> vector<16x32xf32>
      %124 = vector.extract_strided_slice %114 {offsets = [0, 8, 0], sizes = [2, 8, 16], strides = [1, 1, 1]} : vector<2x32x16xf32> to vector<2x8x16xf32>
      %125 = vector.shape_cast %124 : vector<2x8x16xf32> to vector<16x16xf32>
      %126 = arith.truncf %125 : vector<16x16xf32> to vector<16x16xbf16>
      %c4_i32_54 = arith.constant 4 : i32
      %127 = arith.muli %arg13, %c4_i32_54 : i32
      %c1_i32_55 = arith.constant 1 : i32
      %128 = arith.addi %127, %c1_i32_55 : i32
      %129 = arith.index_cast %128 : i32 to index
      %c0_56 = arith.constant 0 : index
      %c0_57 = arith.constant 0 : index
      %130 = vector.load %arg6[%129, %c0_56, %c0_57] : memref<8x16x32xbf16, #tpu.memory_space<vmem>>, vector<1x16x32xbf16>
      %131 = vector.shape_cast %130 : vector<1x16x32xbf16> to vector<16x32xbf16>
      %cst_58 = arith.constant dense<0.000000e+00> : vector<16x32xf32>
      %132 = tpu.matmul %126, %131, %cst_58 {dimension_numbers = #tpu.dot_dimension_numbers<[1], [0], [0], [1], [0, 0, 1, 1], [], []>} : vector<16x16xbf16>, vector<16x32xbf16>, vector<16x32xf32> -> vector<16x32xf32>
      %133 = arith.addf %123, %132 : vector<16x32xf32>
      %134 = vector.extract_strided_slice %114 {offsets = [0, 16, 0], sizes = [2, 8, 16], strides = [1, 1, 1]} : vector<2x32x16xf32> to vector<2x8x16xf32>
      %135 = vector.shape_cast %134 : vector<2x8x16xf32> to vector<16x16xf32>
      %136 = arith.truncf %135 : vector<16x16xf32> to vector<16x16xbf16>
      %c4_i32_59 = arith.constant 4 : i32
      %137 = arith.muli %arg13, %c4_i32_59 : i32
      %c2_i32_60 = arith.constant 2 : i32
      %138 = arith.addi %137, %c2_i32_60 : i32
      %139 = arith.index_cast %138 : i32 to index
      %c0_61 = arith.constant 0 : index
      %c0_62 = arith.constant 0 : index
      %140 = vector.load %arg6[%139, %c0_61, %c0_62] : memref<8x16x32xbf16, #tpu.memory_space<vmem>>, vector<1x16x32xbf16>
      %141 = vector.shape_cast %140 : vector<1x16x32xbf16> to vector<16x32xbf16>
      %cst_63 = arith.constant dense<0.000000e+00> : vector<16x32xf32>
      %142 = tpu.matmul %136, %141, %cst_63 {dimension_numbers = #tpu.dot_dimension_numbers<[1], [0], [0], [1], [0, 0, 1, 1], [], []>} : vector<16x16xbf16>, vector<16x32xbf16>, vector<16x32xf32> -> vector<16x32xf32>
      %143 = arith.addf %133, %142 : vector<16x32xf32>
      %144 = vector.extract_strided_slice %114 {offsets = [0, 24, 0], sizes = [2, 8, 16], strides = [1, 1, 1]} : vector<2x32x16xf32> to vector<2x8x16xf32>
      %145 = vector.shape_cast %144 : vector<2x8x16xf32> to vector<16x16xf32>
      %146 = arith.truncf %145 : vector<16x16xf32> to vector<16x16xbf16>
      %c4_i32_64 = arith.constant 4 : i32
      %147 = arith.muli %arg13, %c4_i32_64 : i32
      %c3_i32 = arith.constant 3 : i32
      %148 = arith.addi %147, %c3_i32 : i32
      %149 = arith.index_cast %148 : i32 to index
      %c0_65 = arith.constant 0 : index
      %c0_66 = arith.constant 0 : index
      %150 = vector.load %arg6[%149, %c0_65, %c0_66] : memref<8x16x32xbf16, #tpu.memory_space<vmem>>, vector<1x16x32xbf16>
      %151 = vector.shape_cast %150 : vector<1x16x32xbf16> to vector<16x32xbf16>
      %cst_67 = arith.constant dense<0.000000e+00> : vector<16x32xf32>
      %152 = tpu.matmul %146, %151, %cst_67 {dimension_numbers = #tpu.dot_dimension_numbers<[1], [0], [0], [1], [0, 0, 1, 1], [], []>} : vector<16x16xbf16>, vector<16x32xbf16>, vector<16x32xf32> -> vector<16x32xf32>
      %153 = arith.addf %143, %152 : vector<16x32xf32>
      %154 = arith.index_cast %arg13 : i32 to index
      %c0_68 = arith.constant 0 : index
      %c0_69 = arith.constant 0 : index
      %155 = vector.load %arg7[%154, %c0_68, %c0_69] : memref<2x1x32xf32, #tpu.memory_space<vmem>>, vector<1x1x32xf32>
      %156 = vector.shape_cast %155 : vector<1x1x32xf32> to vector<1x32xf32>
      %cst_70 = arith.constant dense<0.000000e+00> : vector<16xf32>
      %157 = vector.multi_reduction <add>, %153, %cst_70 [1] : vector<16x32xf32> to vector<16xf32>
      %158 = vector.shape_cast %157 : vector<16xf32> to vector<16x1xf32>
      %cst_71 = arith.constant 3.200000e+01 : f32
      %159 = vector.broadcast %cst_71 : f32 to vector<16x1xf32>
      %160 = arith.divf %158, %159 : vector<16x1xf32>
      %161 = vector.broadcast %160 : vector<16x1xf32> to vector<16x32xf32>
      %162 = arith.subf %153, %161 : vector<16x32xf32>
      %163 = arith.mulf %162, %162 : vector<16x32xf32>
      %cst_72 = arith.constant dense<0.000000e+00> : vector<16xf32>
      %164 = vector.multi_reduction <add>, %163, %cst_72 [1] : vector<16x32xf32> to vector<16xf32>
      %165 = vector.shape_cast %164 : vector<16xf32> to vector<16x1xf32>
      %cst_73 = arith.constant 3.200000e+01 : f32
      %166 = vector.broadcast %cst_73 : f32 to vector<16x1xf32>
      %167 = arith.divf %165, %166 : vector<16x1xf32>
      %168 = vector.broadcast %160 : vector<16x1xf32> to vector<16x32xf32>
      %169 = arith.subf %153, %168 : vector<16x32xf32>
      %cst_74 = arith.constant 9.99999974E-6 : f32
      %170 = vector.broadcast %cst_74 : f32 to vector<16x1xf32>
      %171 = arith.addf %167, %170 : vector<16x1xf32>
      %172 = math.rsqrt %171 : vector<16x1xf32>
      %173 = vector.broadcast %172 : vector<16x1xf32> to vector<16x32xf32>
      %174 = arith.mulf %169, %173 : vector<16x32xf32>
      %175 = vector.broadcast %156 : vector<1x32xf32> to vector<16x32xf32>
      %176 = arith.mulf %174, %175 : vector<16x32xf32>
      scf.yield %176 : vector<16x32xf32>
    }
    %c2_i32_5 = arith.constant 2 : i32
    %7 = vector.shape_cast %6 : vector<16x32xf32> to vector<2x8x32xf32>
    %cst = arith.constant dense<0.000000e+00> : vector<2x32xf32>
    %8 = vector.multi_reduction <add>, %7, %cst [1] : vector<2x8x32xf32> to vector<2x32xf32>
    %cst_6 = arith.constant 8.000000e+00 : f32
    %9 = vector.broadcast %cst_6 : f32 to vector<2x32xf32>
    %10 = arith.divf %8, %9 : vector<2x32xf32>
    %11 = arith.truncf %10 : vector<2x32xf32> to vector<2x32xbf16>
    %c0_7 = arith.constant 0 : index
    %c0_8 = arith.constant 0 : index
    %12 = vector.load %arg8[%c0_7, %c0_8] : memref<32x24xbf16, #tpu.memory_space<vmem>>, vector<32x24xbf16>
    %cst_9 = arith.constant dense<0.000000e+00> : vector<2x24xf32>
    %13 = tpu.matmul %11, %12, %cst_9 {dimension_numbers = #tpu.dot_dimension_numbers<[1], [0], [0], [1], [0, 0, 1, 1], [], []>} : vector<2x32xbf16>, vector<32x24xbf16>, vector<2x24xf32> -> vector<2x24xf32>
    %c0_10 = arith.constant 0 : index
    %c0_11 = arith.constant 0 : index
    %14 = vector.load %arg9[%c0_10, %c0_11] : memref<1x24xf32, #tpu.memory_space<vmem>>, vector<1x24xf32>
    %15 = vector.broadcast %14 : vector<1x24xf32> to vector<2x24xf32>
    %16 = arith.addf %13, %15 : vector<2x24xf32>
    %cst_12 = arith.constant 5.000000e-01 : f32
    %17 = vector.broadcast %cst_12 : f32 to vector<2x24xf32>
    %18 = arith.mulf %17, %16 : vector<2x24xf32>
    %cst_13 = arith.constant 0.707106769 : f32
    %19 = vector.broadcast %cst_13 : f32 to vector<2x24xf32>
    %20 = arith.mulf %16, %19 : vector<2x24xf32>
    %21 = math.absf %20 : vector<2x24xf32>
    %cst_14 = arith.constant 0.327591091 : f32
    %22 = vector.broadcast %cst_14 : f32 to vector<2x24xf32>
    %23 = arith.mulf %22, %21 : vector<2x24xf32>
    %cst_15 = arith.constant 1.000000e+00 : f32
    %24 = vector.broadcast %cst_15 : f32 to vector<2x24xf32>
    %25 = arith.addf %24, %23 : vector<2x24xf32>
    %cst_16 = arith.constant 1.000000e+00 : f32
    %26 = vector.broadcast %cst_16 : f32 to vector<2x24xf32>
    %27 = arith.divf %26, %25 : vector<2x24xf32>
    %cst_17 = arith.constant 1.06140542 : f32
    %28 = vector.broadcast %cst_17 : f32 to vector<2x24xf32>
    %29 = arith.mulf %28, %27 : vector<2x24xf32>
    %cst_18 = arith.constant -1.45315206 : f32
    %30 = vector.broadcast %cst_18 : f32 to vector<2x24xf32>
    %31 = arith.addf %29, %30 : vector<2x24xf32>
    %32 = arith.mulf %31, %27 : vector<2x24xf32>
    %cst_19 = arith.constant 1.42141378 : f32
    %33 = vector.broadcast %cst_19 : f32 to vector<2x24xf32>
    %34 = arith.addf %32, %33 : vector<2x24xf32>
    %35 = arith.mulf %34, %27 : vector<2x24xf32>
    %cst_20 = arith.constant -0.284496725 : f32
    %36 = vector.broadcast %cst_20 : f32 to vector<2x24xf32>
    %37 = arith.addf %35, %36 : vector<2x24xf32>
    %38 = arith.mulf %37, %27 : vector<2x24xf32>
    %cst_21 = arith.constant 0.254829586 : f32
    %39 = vector.broadcast %cst_21 : f32 to vector<2x24xf32>
    %40 = arith.addf %38, %39 : vector<2x24xf32>
    %41 = arith.mulf %40, %27 : vector<2x24xf32>
    %cst_22 = arith.constant 0.000000e+00 : f32
    %42 = vector.broadcast %cst_22 : f32 to vector<2x24xf32>
    %43 = arith.subf %42, %21 : vector<2x24xf32>
    %44 = arith.mulf %43, %21 : vector<2x24xf32>
    %45 = math.exp %44 : vector<2x24xf32>
    %46 = arith.mulf %41, %45 : vector<2x24xf32>
    %cst_23 = arith.constant 1.000000e+00 : f32
    %47 = vector.broadcast %cst_23 : f32 to vector<2x24xf32>
    %48 = arith.subf %47, %46 : vector<2x24xf32>
    %cst_24 = arith.constant 0.000000e+00 : f32
    %49 = vector.broadcast %cst_24 : f32 to vector<2x24xf32>
    %50 = arith.cmpf oge, %20, %49 : vector<2x24xf32>
    %cst_25 = arith.constant 0.000000e+00 : f32
    %51 = vector.broadcast %cst_25 : f32 to vector<2x24xf32>
    %52 = arith.subf %51, %48 : vector<2x24xf32>
    %53 = arith.select %50, %48, %52 : vector<2x24xi1>, vector<2x24xf32>
    %cst_26 = arith.constant 1.000000e+00 : f32
    %54 = vector.broadcast %cst_26 : f32 to vector<2x24xf32>
    %55 = arith.addf %54, %53 : vector<2x24xf32>
    %56 = arith.mulf %18, %55 : vector<2x24xf32>
    %57 = arith.truncf %56 : vector<2x24xf32> to vector<2x24xbf16>
    %c0_27 = arith.constant 0 : index
    %c0_28 = arith.constant 0 : index
    %58 = vector.load %arg10[%c0_27, %c0_28] : memref<24x128xbf16, #tpu.memory_space<vmem>>, vector<24x128xbf16>
    %cst_29 = arith.constant dense<0.000000e+00> : vector<2x128xf32>
    %59 = tpu.matmul %57, %58, %cst_29 {dimension_numbers = #tpu.dot_dimension_numbers<[1], [0], [0], [1], [0, 0, 1, 1], [], []>} : vector<2x24xbf16>, vector<24x128xbf16>, vector<2x128xf32> -> vector<2x128xf32>
    %c0_30 = arith.constant 0 : index
    %c0_31 = arith.constant 0 : index
    %60 = vector.load %arg11[%c0_30, %c0_31] : memref<1x128xf32, #tpu.memory_space<vmem>>, vector<1x128xf32>
    %61 = vector.broadcast %60 : vector<1x128xf32> to vector<2x128xf32>
    %62 = arith.addf %59, %61 : vector<2x128xf32>
    %c0_32 = arith.constant 0 : index
    %c0_33 = arith.constant 0 : index
    %63 = vector.load %arg12[%c0_32, %c0_33] : memref<2x128xf32, #tpu.memory_space<vmem>>, vector<2x128xf32>
    tpu.vector_store %arg12[%c0_32, %c0_33], %62 {strides = array<i32>} : memref<2x128xf32, #tpu.memory_space<vmem>>, vector<2x128xf32>,
    return
  }
  func.func @transform_0(%arg0: i32) -> (i32, i32, i32) {
    %c0_i32 = arith.constant 0 : i32
    %c0_i32_0 = arith.constant 0 : i32
    %c0_i32_1 = arith.constant 0 : i32
    return %arg0, %c0_i32, %c0_i32_0 : i32, i32, i32
  }
  func.func @transform_1(%arg0: i32) -> (i32, i32, i32) {
    %c0_i32 = arith.constant 0 : i32
    %c0_i32_0 = arith.constant 0 : i32
    %c0_i32_1 = arith.constant 0 : i32
    %c0_i32_2 = arith.constant 0 : i32
    return %c0_i32, %c0_i32_0, %c0_i32_1 : i32, i32, i32
  }
  func.func @transform_2(%arg0: i32) -> (i32, i32, i32) {
    %c0_i32 = arith.constant 0 : i32
    %c0_i32_0 = arith.constant 0 : i32
    %c0_i32_1 = arith.constant 0 : i32
    %c0_i32_2 = arith.constant 0 : i32
    return %c0_i32, %c0_i32_0, %c0_i32_1 : i32, i32, i32
  }
  func.func @transform_3(%arg0: i32) -> (i32, i32, i32) {
    %c0_i32 = arith.constant 0 : i32
    %c0_i32_0 = arith.constant 0 : i32
    %c0_i32_1 = arith.constant 0 : i32
    %c0_i32_2 = arith.constant 0 : i32
    return %c0_i32, %c0_i32_0, %c0_i32_1 : i32, i32, i32
  }
  func.func @transform_4(%arg0: i32) -> (i32, i32, i32) {
    %c0_i32 = arith.constant 0 : i32
    %c0_i32_0 = arith.constant 0 : i32
    %c0_i32_1 = arith.constant 0 : i32
    %c0_i32_2 = arith.constant 0 : i32
    return %c0_i32, %c0_i32_0, %c0_i32_1 : i32, i32, i32
  }
  func.func @transform_5(%arg0: i32) -> (i32, i32, i32) {
    %c0_i32 = arith.constant 0 : i32
    %c0_i32_0 = arith.constant 0 : i32
    %c0_i32_1 = arith.constant 0 : i32
    %c0_i32_2 = arith.constant 0 : i32
    return %c0_i32, %c0_i32_0, %c0_i32_1 : i32, i32, i32
  }
  func.func @transform_6(%arg0: i32) -> (i32, i32, i32) {
    %c0_i32 = arith.constant 0 : i32
    %c0_i32_0 = arith.constant 0 : i32
    %c0_i32_1 = arith.constant 0 : i32
    %c0_i32_2 = arith.constant 0 : i32
    return %c0_i32, %c0_i32_0, %c0_i32_1 : i32, i32, i32
  }
  func.func @transform_7(%arg0: i32) -> (i32, i32) {
    %c0_i32 = arith.constant 0 : i32
    %c0_i32_0 = arith.constant 0 : i32
    %c0_i32_1 = arith.constant 0 : i32
    return %c0_i32, %c0_i32_0 : i32, i32
  }
  func.func @transform_8(%arg0: i32) -> (i32, i32) {
    %c0_i32 = arith.constant 0 : i32
    %c0_i32_0 = arith.constant 0 : i32
    %c0_i32_1 = arith.constant 0 : i32
    return %c0_i32, %c0_i32_0 : i32, i32
  }
  func.func @transform_9(%arg0: i32) -> (i32, i32) {
    %c0_i32 = arith.constant 0 : i32
    %c0_i32_0 = arith.constant 0 : i32
    %c0_i32_1 = arith.constant 0 : i32
    return %c0_i32, %c0_i32_0 : i32, i32
  }
  func.func @transform_10(%arg0: i32) -> (i32, i32) {
    %c0_i32 = arith.constant 0 : i32
    %c0_i32_0 = arith.constant 0 : i32
    %c0_i32_1 = arith.constant 0 : i32
    return %c0_i32, %c0_i32_0 : i32, i32
  }
  func.func @transform_11(%arg0: i32) -> (i32, i32) {
    %c0_i32 = arith.constant 0 : i32
    %c0_i32_0 = arith.constant 0 : i32
    return %arg0, %c0_i32 : i32, i32
  }
}

</mosaic_0001>

<bundles_post_ra>
// kernel: tpu_custom_call.1
= control target key start
LH: loop header
LB: loop body
LE: loop exit
PB: predicated region body
PF: predicated region fallthrough
CT: control target
= control target key end

     0   :  { %16 = vsyncpa [#allocation3], 0  ;;  %s1806_s0 = inlined_call_operand.hbm [shape: f32[2,8,32], index: 0, kind: input, shape index: {}]   ;;  %s1807_s1 = inlined_call_operand.hbm [shape: f32[1,8,32], index: 1, kind: input, shape index: {}]   ;;  %s1808_s2 = inlined_call_operand.hbm [shape: bf16[2,16,32], index: 2, kind: input, shape index: {}]   ;;  %s1809_s3 = inlined_call_operand.vmem [shape: f32[2,1,32], index: 3, kind: input, shape index: {}]   ;;  %s1810_s4 = inlined_call_operand.vmem [shape: bf16[2,32,32], index: 4, kind: input, shape index: {}]   ;;  %s1811_s5 = inlined_call_operand.hbm [shape: bf16[8,16,32], index: 5, kind: input, shape index: {}]   ;;  %s1812_s6 = inlined_call_operand.hbm [shape: f32[2,1,32], index: 6, kind: input, shape index: {}]   ;;  %s1813_s7 = inlined_call_operand.vmem [shape: bf16[32,24], index: 7, kind: input, shape index: {}]   ;;  %s1814_s8 = inlined_call_operand.hbm [shape: f32[1,24], index: 8, kind: input, shape index: {}]   ;;  %s1815_s9 = inlined_call_operand.vmem [shape: bf16[24,128], index: 9, kind: input, shape index: {}]   ;;  %s1816_s10 = inlined_call_operand.vmem [shape: f32[1,128], index: 10, kind: input, shape index: {}]   ;;  %s1817_s11 = inlined_call_operand.hbm [shape: f32[2,128], index: 11, kind: output, shape index: {}]  }
   0x1   :  { %17 = vsyncpa [#allocation6], 0 }
   0x2   :  { %18 = vsyncpa [#allocation9], 0 }
   0x3   :  { %19 = vsyncpa [#allocation12], 0 }
   0x4   :  { %20 = vsyncpa [#allocation4], 0  ;;  %s1519_s17 = smov [#allocation5]   ;;  %s1331_s21 = scalar_lea.hbm %s1807_s1, 128 }
   0x5   :  { %s39_s18 = sshll.u32 %s1519_s17, 4  ;;  %p1332_p0 = scmp.ne.s32.totalorder %s1807_s1, %s1331_s21  ;;  %s40_s18 = int_to_ptr.vmem [resolvable:$true] %s39_s18 }
   0x6   :  { %p1335_p1 = scmp.lt.u32.totalorder %s1331_s21, %s1807_s1 }
   0x8   :  { %p1337_p2 = pnand %p1335_p1, %p1332_p0 }
   0xa   :  { %1340 = shalt.err (!%p1337_p2)
}
   0xb   :  { %s1341_s26 = scalar_lea.vmem %s40_s18, 128  ;;  %p1346_p4 = scmp.lt.s32.totalorder %s40_s18, %s40_s18 }
   0xc   :  { %p1342_p3 = scmp.ne.s32.totalorder %s40_s18, %s1341_s26  ;;  %p1347_p5 = scmp.lt.s32.totalorder %s1341_s26, %s1341_s26 }
   0xe   :  { %p1348_p6 = por %p1347_p5, %p1346_p4 }
  0x10   :  { %p1349_p7 = pnand %p1348_p6, %p1342_p3 }
  0x12   :  { %1352 = shalt.err (!%p1349_p7)
}
  0x13   :  { %42 = dma.hbm_to_vmem [thread:$0]  %s1807_s1, 128, %s40_s18, [#allocation6]  }
  0x14   :  { %s1520_s29 = smov [#allocation8]   ;;  %s1521_s12 = smov [#allocation2]  }
  0x15   :  { %s64_s30 = sshll.u32 %s1520_s29, 4  ;;  %s26_s13 = sshll.u32 %s1521_s12, 4  ;;  %s65_s30 = int_to_ptr.vmem [resolvable:$true] %s64_s30  ;;  %s27_s13 = int_to_ptr.vmem [resolvable:$true] %s26_s13 }
  0x16   :  { %s1353_s16 = scalar_lea.hbm %s1811_s5, 1024 }
  0x17   :  { %p1354_p8 = scmp.ne.s32.totalorder %s1811_s5, %s1353_s16  ;;  %p1357_p9 = scmp.lt.u32.totalorder %s1353_s16, %s1811_s5 }
  0x19   :  { %p1359_p10 = pnand %p1357_p9, %p1354_p8 }
  0x1b   :  { %1362 = shalt.err (!%p1359_p10)
}
  0x1c   :  { %s1363_s1 = scalar_lea.vmem %s65_s30, 1024  ;;  %p1368_p12 = scmp.lt.s32.totalorder %s65_s30, %s65_s30 }
  0x1d   :  { %p1364_p11 = scmp.ne.s32.totalorder %s65_s30, %s1363_s1  ;;  %p1369_p13 = scmp.lt.s32.totalorder %s1363_s1, %s1363_s1 }
  0x1f   :  { %p1370_p0 = por %p1369_p13, %p1368_p12 }
  0x21   :  { %p1371_p1 = pnand %p1370_p0, %p1364_p11 }
  0x23   :  { %1374 = shalt.err (!%p1371_p1)
}
  0x24   :  { %s1522_s18 = smov 64   ;;  %s1523_s22 = smov 4  }
  0x25   :  { %70 = dma.hbm_to_vmem [thread:$0]  %s1811_s5, 1024, %s65_s30, [#allocation9], %s1522_s18, %s1522_s18, %s1523_s22  }
  0x26   :  { %s1375_s27 = scalar_lea.hbm %s1806_s0, 256 }
  0x27   :  { %p1376_p2 = scmp.ne.s32.totalorder %s1806_s0, %s1375_s27  ;;  %p1379_p3 = scmp.lt.u32.totalorder %s1375_s27, %s1806_s0 }
  0x29   :  { %p1381_p4 = pnand %p1379_p3, %p1376_p2 }
  0x2b   :  { %1384 = shalt.err (!%p1381_p4)
}
  0x2c   :  { %s1385_s15 = scalar_lea.vmem %s27_s13, 256  ;;  %p1390_p6 = scmp.lt.s32.totalorder %s27_s13, %s27_s13 }
  0x2d   :  { %p1386_p5 = scmp.ne.s32.totalorder %s27_s13, %s1385_s15  ;;  %p1391_p7 = scmp.lt.s32.totalorder %s1385_s15, %s1385_s15 }
  0x2f   :  { %p1392_p8 = por %p1391_p7, %p1390_p6 }
  0x31   :  { %p1393_p9 = pnand %p1392_p8, %p1386_p5 }
  0x33   :  { %1396 = shalt.err (!%p1393_p9)
}
  0x34   :  { %s1524_s5 = smov 128   ;;  %s1525_s30 = smov 8  }
  0x35   :  { %32 = dma.hbm_to_vmem [thread:$0]  %s1806_s0, 256, %s27_s13, [#allocation3], %s1524_s5, %s1524_s5, %s1525_s30  }
  0x36   :  { %s1526_s19 = smov [#allocation7]   ;;  %s1527_s21 = smov [#allocation10]  }
  0x37   :  { %s48_s20 = sshll.u32 %s1526_s19, 4  ;;  %s76_s1 = sshll.u32 %s1527_s21, 4  ;;  %s49_s20 = int_to_ptr.vmem [resolvable:$true] %s48_s20  ;;  %s77_s1 = int_to_ptr.vmem [resolvable:$true] %s76_s1 }
  0x38   :  { %s1397_s25 = scalar_lea.hbm %s1808_s2, 256 }
  0x39   :  { %p1398_p10 = scmp.ne.s32.totalorder %s1808_s2, %s1397_s25  ;;  %p1401_p11 = scmp.lt.u32.totalorder %s1397_s25, %s1808_s2 }
  0x3b   :  { %p1403_p12 = pnand %p1401_p11, %p1398_p10 }
  0x3d   :  { %1406 = shalt.err (!%p1403_p12)
}
  0x3e   :  { %s1407_s0 = scalar_lea.vmem %s49_s20, 256  ;;  %p1412_p0 = scmp.lt.s32.totalorder %s49_s20, %s49_s20 }
  0x3f   :  { %p1408_p13 = scmp.ne.s32.totalorder %s49_s20, %s1407_s0  ;;  %p1413_p1 = scmp.lt.s32.totalorder %s1407_s0, %s1407_s0 }
  0x41   :  { %p1414_p2 = por %p1413_p1, %p1412_p0 }
  0x43   :  { %p1415_p3 = pnand %p1414_p2, %p1408_p13 }
  0x45   :  { %1418 = shalt.err (!%p1415_p3)
}
  0x46   :  { %54 = dma.hbm_to_vmem [thread:$0]  %s1808_s2, 256, %s49_s20, [#allocation6], %s1522_s18, %s1522_s18, %s1523_s22  }
  0x47   :  { %s1419_s5 = scalar_lea.hbm %s1812_s6, 32 }
  0x48   :  { %p1420_p4 = scmp.ne.s32.totalorder %s1812_s6, %s1419_s5  ;;  %p1423_p5 = scmp.lt.u32.totalorder %s1419_s5, %s1812_s6 }
  0x4a   :  { %p1425_p6 = pnand %p1423_p5, %p1420_p4 }
  0x4c   :  { %1428 = shalt.err (!%p1425_p6)
}
  0x4d   :  { %s1429_s21 = scalar_lea.vmem %s77_s1, 32  ;;  %p1434_p8 = scmp.lt.s32.totalorder %s77_s1, %s77_s1 }
  0x4e   :  { %p1430_p7 = scmp.ne.s32.totalorder %s77_s1, %s1429_s21  ;;  %p1435_p9 = scmp.lt.s32.totalorder %s1429_s21, %s1429_s21 }
  0x50   :  { %p1436_p10 = por %p1435_p9, %p1434_p8 }
  0x52   :  { %p1437_p11 = pnand %p1436_p10, %p1430_p7 }
  0x54   :  { %1440 = shalt.err (!%p1437_p11)
}
  0x55   :  { %s1528_s2 = smov 16   ;;  %s1529_s18 = smov 1  }
  0x56   :  { %82 = dma.hbm_to_vmem [thread:$0]  %s1812_s6, 32, %s77_s1, [#allocation9], %s1528_s2, %s1528_s2, %s1529_s18  }
  0x57   :  { %s1530_s23 = smov [#allocation11]   ;;  %s1441_s27 = scalar_lea.hbm %s1814_s8, 16 }
  0x58   :  { %s91_s24 = sshll.u32 %s1530_s23, 4  ;;  %p1442_p12 = scmp.ne.s32.totalorder %s1814_s8, %s1441_s27  ;;  %s92_s24 = int_to_ptr.vmem [resolvable:$true] %s91_s24 }
  0x59   :  { %p1445_p13 = scmp.lt.u32.totalorder %s1441_s27, %s1814_s8 }
  0x5b   :  { %p1447_p0 = pnand %p1445_p13, %p1442_p12 }
  0x5d   :  { %1450 = shalt.err (!%p1447_p0)
}
  0x5e   :  { %s1451_s12 = scalar_lea.vmem %s92_s24, 16  ;;  %s1455_s6 = scalar_lea.vmem %s92_s24, 32 }
  0x5f   :  { %p1452_p1 = scmp.ne.s32.totalorder %s92_s24, %s1451_s12  ;;  %p1456_p2 = scmp.lt.s32.totalorder %s92_s24, %s92_s24 }
  0x60   :  { %p1457_p3 = scmp.lt.s32.totalorder %s1455_s6, %s1451_s12 }
  0x62   :  { %p1458_p4 = por %p1457_p3, %p1456_p2 }
  0x64   :  { %p1459_p5 = pnand %p1458_p4, %p1452_p1 }
  0x66   :  { %1462 = shalt.err (!%p1459_p5)
}
  0x67   :  { %94 = dma.hbm_to_vmem [thread:$0]  %s1814_s8, 16, %s92_s24, [#allocation12]  }
  0x68   :  { %1497 = dma.done.wait [#allocation3], 256  }
  0x69   :  { %1498 = vsyncadd [#allocation3], 4294967040 }
  0x6a   :  { %1499 = dma.done.wait [#allocation6], 384  }
  0x6b   :  { %1500 = vsyncadd [#allocation6], 4294966912 }
  0x6c   :  { %1501 = dma.done.wait [#allocation9], 1056  }
  0x6d   :  { %1502 = vsyncadd [#allocation9], 4294966240 }
  0x6e   :  { %1503 = dma.done.wait [#allocation12], 16  }
  0x6f   :  { %1504 = vsyncadd [#allocation12], 4294967280  ;;  %v118_v0 = vld [vmem:[#allocation2] sm:$0xff]  ;;  %v119_v1 = vld [vmem:[#allocation2 + $0x8] sm:$0xff]  ;;  %s1679_s15 = smov 0  }
  0x70   :  { %v120_v2 = vld [vmem:[#allocation5] sm:$0xff] }
  0x71   :  { %v121_v3 = vadd.f32 %v120_v2, %v118_v0   ;;  %v122_v4 = vadd.f32 %v120_v2, %v119_v1  }
  0x72 LB: > { %vm133_vm0 = vcmask 261120   ;;  %v1531_v17 = vmov 0.0   ;;  %vm1532_vm1 = vmmov 0   ;;  %s1122_s8 = sshll.u32 %s1517_s15, 4  ;;  %s1123_s17 = sshll.u32 %s1517_s15, 3  ;;  %vm247_vm2 = vcmask 130048   ;;  %s1517_s15 = sphi %s1679_s15, %s128_s15   ;;  %v1513_v3 = vphi %v121_v3, %v1819_v3   ;;  %v1509_v4 = vphi %v122_v4, %v1818_v4  }
  0x73   : > { %v134_v5 = vsel %vm133_vm0, %v1513_v3, 0.0  ;;  %v137_v6 = vsel %vm133_vm0, %v1509_v4, 0.0  ;;  %1154 = vmatprep.subr.bf16.mxu0 %v1531_v17  ;;  %1158 = vmatprep.mubr.msk.bf16.mxu0 %vm1532_vm1, %v1531_v17  ;;  %s172_s16 = scalar_lea.vmem %s1810_s4, %s1122_s8  ;;  %s238_s19 = scalar_lea.vmem [#allocation7], %s1123_s17  ;;  %vm356_vm3 = vcmask 64512   ;;  %vm458_vm4 = vcmask 1043456  }
  0x74   : > { %135 = vadd.xlane.f32.xlu0 %v134_v5  ;;  %1180 = vmatprep.subr.bf16.mxu1 %v1531_v17  ;;  %v1276_v18 = vld [vmem:[%s172_s16] sm:$0xff]   ;;  %v1277_v19 = vld [vmem:[%s172_s16 + $0x8] sm:$0xff]   ;;  %s131_s18 = scalar_lea.vmem %s1809_s3, %s1517_s15  ;;  %s1533_s22 = smov 112  }
  0x75   : > { %1182 = vmatprep.mubr.msk.bf16.mxu1 %vm1532_vm1, %v1531_v17  ;;  %1155 = vmatpush3.bf16.msra.mxu0 %v1276_v18  ;;  %v1077_v29 = vld [vmem:[%s131_s18] ss:$0 sm:$0xff]  ;;  %s1125_s20 = sshll.u32 %s1517_s15, 5  ;;  %s803_s24 = scalar_lea.vmem [#allocation10], %s1517_s15 }
  0x76   : > { %1156 = vmatprep.subr.bf16.mxu0 %v1531_v17  ;;  %v1278_v33 = vld [vmem:[%s238_s19] sm:$0xff]   ;;  %s575_s23 = scalar_lea.vmem [#allocation8], %s1125_s20  ;;  %s128_s15 = sadd.s32 1, %s1517_s15  }
  0x77   : > { %p125_p6 = scmp.ge.s32.totalorder %s128_s15, 2  }
  0x78   : > { %138 = vadd.xlane.f32.xlu0 %v137_v6  ;;  %vm1535_vm5 = vmmov (%p125_p6), 0   ;;  %vm874_vm6 = vcmask (%p125_p6), 1041409   ;;  %vm979_vm8 = vcmask (%p125_p6), 195584   ;;  %s1536_s13 = smov (%p125_p6), [#allocation13]  }
  0x79   : > { %1157 = vmatpush3.bf16.msra.mxu0 %v1277_v19  ;;  %s1034_s12 = sshll.u32 (%p125_p6), %s1536_s13, 4  ;;  %s1035_s12 = int_to_ptr.vmem [resolvable:$true] %s1034_s12 }
  0x7a   : > { %1162 = vmatprep.subr.bf16.mxu0 %v1531_v17  ;;  %s1463_s6 = scalar_lea.vmem (%p125_p6), %s1035_s12, 32  ;;  %p1468_p8 = scmp.lt.s32.totalorder (%p125_p6), %s1035_s12, %s1035_s12 }
  0x7b   :  { %p1464_p7 = scmp.ne.s32.totalorder (%p125_p6), %s1035_s12, %s1463_s6  ;;  %p1469_p9 = scmp.lt.s32.totalorder (%p125_p6), %s1463_s6, %s1463_s6 }
  0x7d   :  { %p1470_p10 = por (%p125_p6), %p1469_p9, %p1468_p8 }
  0x7f   :  { %p1471_p11 = pnand (%p125_p6), %p1470_p10, %p1464_p7 }
 0x101   : > { %v136_v7 = vpop.xlane.xlu0 %135 }
 0x102   : > { %v141_v8 = vmul.f32 0.03125, %v136_v7 }
 0x104   : > { %v143_v9 = vsub.f32 %v1513_v3, %v141_v8 }
 0x105   : > { %v139_v10 = vpop.xlane.xlu0 %138 }
 0x106   : > { %v142_v11 = vmul.f32 0.03125, %v139_v10  ;;  %v145_v12 = vmul.f32 %v143_v9, %v143_v9 }
 0x108   : > { %v144_v13 = vsub.f32 %v1509_v4, %v142_v11  ;;  %v147_v14 = vsel %vm133_vm0, %v145_v12, 0.0 }
 0x109   : > { %148 = vadd.xlane.f32.xlu1 %v147_v14 }
 0x10a   : > { %v146_v15 = vmul.f32 %v144_v13, %v144_v13 }
 0x10c   : > { %v150_v16 = vsel %vm133_vm0, %v146_v15, 0.0 }
 0x10d   : > { %151 = vadd.xlane.f32.xlu1 %v150_v16 }
 0x196   : > { %v149_v20 = vpop.xlane.xlu1 %148 }
 0x197   : > { %v153_v21 = vmul.f32 0.03125, %v149_v20 }
 0x199   : > { %v155_v22 = vadd.f32 1e-05, %v153_v21 }
 0x19a   : > { %v152_v23 = vpop.xlane.xlu1 %151 }
 0x19b   : > { %1283 = vrsqrt.f32 %v155_v22  ;;  %v154_v24 = vmul.f32 0.03125, %v152_v23 }
 0x19d   : > { %v156_v25 = vadd.f32 1e-05, %v154_v24 }
 0x19f   : > { %1285 = vrsqrt.f32 %v156_v25 }
 0x1a5   : > { %v1284_v26 = vpop.eup %1283 }
 0x1a6   : > { %v159_v27 = vmul.f32 %v1284_v26, %v143_v9 }
 0x1a8   : > { %v167_v31 = vmul.f32 %v1077_v29, %v159_v27 }
 0x1a9   : > { %v1286_v28 = vpop.eup %1285 }
 0x1aa   : > { %v160_v30 = vmul.f32 %v1286_v28, %v144_v13 }
 0x1ac   : > { %v168_v32 = vmul.f32 %v1077_v29, %v160_v30 }
 0x1ae   : > { %v169_v34 = vpack.c.bf16 %v168_v32, %v167_v31 }
 0x1b0   : > { %1159 = vmatmul.mubr.msk.bf16.vlgmr.msra.gmra.mrb[0].mxu0 %vm133_vm0, %v169_v34 }
 0x1b1   : > { %1163 = vmatpush3.bf16.msra.mxu0 %v1278_v33  ;;  %1164 = vmatprep.mubr.msk.bf16.mxu0 %vm1532_vm1, %v1531_v17 }
 0x283   : > { %v1710_v35 = vpop.f32.mrb[0].mxu0 }
 0x284   : > { %v1160_v36 = vpop.f32.mrb[1].mxu0 }
 0x285   : > { %v1712_v37 = vpop.f32.mrb[2].mxu0 }
 0x286   : > { %v233_v38 = vpack.c.bf16 %v1712_v37, %v1710_v35  ;;  %v1161_v39 = vpop.f32.mrb[3].mxu0 }
 0x287   : > { %v234_v39 = vpack.c.bf16 %v1710_v35, %v1710_v35 }
 0x288   : > { %1165 = vmatmul.mubr.msk.bf16.vlgmr.msra.gmra.mrb[4].mxu0 %vm247_vm2, %v233_v38 }
 0x35b   : > { %v285_v40 = vpop.f32.mrb[4].mxu0 }
 0x35c   : > { %292 = vxpose.xlu0.b32.start.end [1/1] (short) (narrow) %v285_v40, 32  ;;  %v1166_v41 = vpop.f32.mrb[5].mxu0  ;;  %v235_v40 = vpack.c.bf16 %v1712_v37, %v1712_v37 }
 0x35d   : > { %v288_v42 = vpop.f32.mrb[6].mxu0 }
 0x35e   : > { %324 = vxpose.xlu1.b32.start.end [1/1] (short) (narrow) %v288_v42, 32  ;;  %v1167_v43 = vpop.f32.mrb[7].mxu0 }
 0x3dc   : > { %v308_v44 = vpop.trf.xlu0 }
 0x3dd   : > { %v357_v45 = vsel %vm356_vm3, %v308_v44, -inf }
 0x3de   : > { %358 = vmax.xlane.f32.xlu0 %v357_v45  ;;  %v340_v46 = vpop.trf.xlu1 }
 0x3df   : > { %v369_v53 = vsel %vm356_vm3, %v340_v46, -inf }
 0x3e0   : > { %v309_v47 = vpop.trf.xlu0 }
 0x3e1   : > { %v360_v48 = vsel %vm356_vm3, %v309_v47, -inf }
 0x3e2   : > { %361 = vmax.xlane.f32.xlu1 %v360_v48  ;;  %v341_v49 = vpop.trf.xlu1 }
 0x3e3   : > { %v372_v56 = vsel %vm356_vm3, %v341_v49, -inf }
 0x3e4   : > { %v310_v50 = vpop.trf.xlu0 }
 0x3e5   : > { %v363_v51 = vsel %vm356_vm3, %v310_v50, -inf }
 0x3e6   : > { %364 = vmax.xlane.f32.xlu0 %v363_v51  ;;  %v342_v52 = vpop.trf.xlu1 }
 0x3e7   : > { %v375_v57 = vsel %vm356_vm3, %v342_v52, -inf }
 0x3e8   : > { %v311_v54 = vpop.trf.xlu0 }
 0x3e9   : > { %v366_v55 = vsel %vm356_vm3, %v311_v54, -inf }
 0x3ea   : > { %367 = vmax.xlane.f32.xlu1 %v366_v55  ;;  %370 = vmax.xlane.f32.xlu0 %v369_v53  ;;  %v343_v58 = vpop.trf.xlu1 }
 0x3eb   : > { %v378_v59 = vsel %vm356_vm3, %v343_v58, -inf }
 0x3ee   : > { %373 = vmax.xlane.f32.xlu1 %v372_v56  ;;  %376 = vmax.xlane.f32.xlu0 %v375_v57 }
 0x3f2   : > { %379 = vmax.xlane.f32.xlu1 %v378_v59 }
 0x46b   : > { %v359_v60 = vpop.xlane.xlu0 %358 }
 0x46c   : > { %v381_v61 = vsub.f32 %v308_v44, %v359_v60 }
 0x46e   : > { %v389_v62 = vmul.f32 1.442695, %v381_v61 }
 0x46f   : > { %v362_v63 = vpop.xlane.xlu1 %361 }
 0x470   : > { %1287 = vpow2.f32 %v389_v62  ;;  %v382_v0 = vsub.f32 %v309_v47, %v362_v63 }
 0x472   : > { %v391_v1 = vmul.f32 1.442695, %v382_v0 }
 0x473   : > { %v365_v2 = vpop.xlane.xlu0 %364 }
 0x474   : > { %1289 = vpow2.f32 %v391_v1  ;;  %v383_v3 = vsub.f32 %v310_v50, %v365_v2 }
 0x476   : > { %v393_v8 = vmul.f32 1.442695, %v383_v3 }
 0x477   : > { %v371_v4 = vpop.xlane.xlu0 %370  ;;  %v368_v5 = vpop.xlane.xlu1 %367 }
 0x478   : > { %v385_v6 = vsub.f32 %v340_v46, %v371_v4  ;;  %v384_v10 = vsub.f32 %v311_v54, %v368_v5 }
 0x47a   : > { %v1288_v7 = vpop.eup %1287  ;;  %v397_v9 = vmul.f32 1.442695, %v385_v6  ;;  %v395_v20 = vmul.f32 1.442695, %v384_v10 }
 0x47b   : > { %v377_v11 = vpop.xlane.xlu0 %376  ;;  %v374_v12 = vpop.xlane.xlu1 %373  ;;  %v405_v13 = vsel %vm356_vm3, %v1288_v7, 0.0 }
 0x47c   : > { %1291 = vpow2.f32 %v397_v9  ;;  %v387_v14 = vsub.f32 %v342_v52, %v377_v11  ;;  %v386_v15 = vsub.f32 %v341_v49, %v374_v12  ;;  %406 = vadd.xlane.f32.xlu0 %v405_v13 }
 0x47d   : > { %1293 = vpow2.f32 %v393_v8 }
 0x47e   : > { %v1290_v16 = vpop.eup %1289  ;;  %v401_v18 = vmul.f32 1.442695, %v387_v14  ;;  %v399_v19 = vmul.f32 1.442695, %v386_v15 }
 0x47f   : > { %v380_v21 = vpop.xlane.xlu1 %379  ;;  %v408_v22 = vsel %vm356_vm3, %v1290_v16, 0.0 }
 0x480   : > { %v388_v23 = vsub.f32 %v343_v58, %v380_v21  ;;  %409 = vadd.xlane.f32.xlu1 %v408_v22  ;;  %1295 = vpow2.f32 %v399_v19  ;;  %v1281_v22 = vld [vmem:[%s575_s23 + $0x10] sm:$0xff]  }
 0x481   : > { %1297 = vpow2.f32 %v401_v18 }
 0x482   : > { %1299 = vpow2.f32 %v395_v20  ;;  %v403_v24 = vmul.f32 1.442695, %v388_v23  ;;  %v1280_v20 = vld [vmem:[%s575_s23] sm:$0xff]   ;;  %v1282_v23 = vld [vmem:[%s575_s23 + $0x18] sm:$0xff]  }
 0x484   : > { %1301 = vpow2.f32 %v403_v24 }
 0x486   : > { %v1292_v25 = vpop.eup %1291 }
 0x487   : > { %v417_v26 = vsel %vm356_vm3, %v1292_v25, 0.0  ;;  %v1294_v27 = vpop.eup %1293 }
 0x488   : > { %418 = vadd.xlane.f32.xlu0 %v417_v26  ;;  %v411_v29 = vsel %vm356_vm3, %v1294_v27, 0.0 }
 0x48a   : > { %v1296_v28 = vpop.eup %1295 }
 0x48b   : > { %v1729_v30 = vpop.eup %1297  ;;  %v420_v31 = vsel %vm356_vm3, %v1296_v28, 0.0 }
 0x48c   : > { %412 = vadd.xlane.f32.xlu0 %v411_v29  ;;  %v1300_v32 = vpop.eup %1299  ;;  %421 = vadd.xlane.f32.xlu1 %v420_v31  ;;  %v423_v33 = vsel %vm356_vm3, %v1729_v30, 0.0 }
 0x48d   : > { %v414_v34 = vsel %vm356_vm3, %v1300_v32, 0.0 }
 0x48e   : > { %v1302_v36 = vpop.eup %1301 }
 0x48f   : > { %v426_v38 = vsel %vm356_vm3, %v1302_v36, 0.0 }
 0x490   : > { %424 = vadd.xlane.f32.xlu0 %v423_v33  ;;  %415 = vadd.xlane.f32.xlu1 %v414_v34 }
 0x494   : > { %427 = vadd.xlane.f32.xlu1 %v426_v38 }
 0x4a5   : > { %512 = vrot.lane.b32.xlu1 %v235_v40, %s1533_s22 }
 0x4a6   : > { %450 = vrot.lane.b32.xlu0 %v234_v39, %s1533_s22 }
 0x509   : > { %v407_v41 = vpop.xlane.xlu0 %406 }
 0x50a   : > { %1303 = vrcp.f32 %v407_v41 }
 0x50d   : > { %v410_v42 = vpop.xlane.xlu1 %409 }
 0x50e   : > { %1305 = vrcp.f32 %v410_v42 }
 0x514   : > { %v1304_v44 = vpop.eup %1303 }
 0x515   : > { %v419_v43 = vpop.xlane.xlu0 %418  ;;  %v437_v47 = vmul.f32 %v1304_v44, %v1288_v7  ;;  %v1279_v7 = vld [vmem:[%s575_s23 + $0x8] sm:$0xff]  }
 0x516   : > { %1181 = vmatpush3.bf16.msra.mxu1 %v1279_v7 }
 0x517   : > { %1186 = vmatprep.subr.bf16.mxu1 %v1531_v17 }
 0x518   : > { %v1306_v45 = vpop.eup %1305 }
 0x519   : > { %v413_v46 = vpop.xlane.xlu0 %412  ;;  %v438_v48 = vmul.f32 %v1306_v45, %v1290_v16  ;;  %v422_v49 = vpop.xlane.xlu1 %421 }
 0x51a   : > { %1307 = vrcp.f32 %v422_v49 }
 0x51b   : > { %v445_v50 = vpack.c.bf16 %v438_v48, %v437_v47  ;;  %1309 = vrcp.f32 %v413_v46  ;;  %v1113_v48 = vld [vmem:[%s803_s24] ss:$0 sm:$0xff] }
 0x51c   : > { %1311 = vrcp.f32 %v419_v43 }
 0x51d   : > { %v425_v35 = vpop.xlane.xlu0 %424  ;;  %1170 = vmatprep.mubr.msk.bf16.mxu0 %vm356_vm3, %v445_v50  ;;  %v416_v37 = vpop.xlane.xlu1 %415 }
 0x51e   : > { %1313 = vrcp.f32 %v416_v37 }
 0x521   : > { %v451_v51 = vpop.permute.xlu0 %450  ;;  %v428_v53 = vpop.xlane.xlu1 %427 }
 0x522   : > { %v460_v52 = vsel %vm458_vm4, %v451_v51, 0  ;;  %1232 = vmatprep.subr.msk.bf16.mxu0 %vm458_vm4, %v451_v51  ;;  %1315 = vrcp.f32 %v428_v53  ;;  %v1534_v53 = vmov (%p125_p6), 0.0  }
 0x523   : > { %1169 = vmatpush3.bf16.msra.mxu0 %v460_v52  ;;  %1317 = vrcp.f32 %v425_v35  ;;  %v1323_v52 = vld [vmem:[%s1813_s7] sm:$0xff] (%p125_p6)  }
 0x524   : > { %v1308_v54 = vpop.eup %1307 }
 0x525   : > { %v513_v55 = vpop.permute.xlu1 %512  ;;  %v1310_v56 = vpop.eup %1309  ;;  %v442_v59 = vmul.f32 %v1308_v54, %v1296_v28  ;;  %v1324_v54 = vld [vmem:[%s1813_s7 + $0x8] sm:$0xff] (%p125_p6)  }
 0x526   : > { %1233 = vmatprep.subr.msk.bf16.mxu0 %vm458_vm4, %v513_v55  ;;  %v1312_v57 = vpop.eup %1311  ;;  %v439_v60 = vmul.f32 %v1310_v56, %v1294_v27  ;;  %v521_v2 = vsel %vm458_vm4, %v513_v55, 0 }
 0x527   : > { %v441_v62 = vmul.f32 %v1312_v57, %v1292_v25 }
 0x528   : > { %v1314_v58 = vpop.eup %1313 }
 0x529   : > { %v440_v61 = vmul.f32 %v1314_v58, %v1300_v32  ;;  %v447_v1 = vpack.c.bf16 %v442_v59, %v441_v62 }
 0x52b   : > { %v446_v63 = vpack.c.bf16 %v440_v61, %v439_v60 }
 0x52c   : > { %v1316_v0 = vpop.eup %1315 }
 0x52d   : > { %1171 = vmatmul.mubr.msk.bf16.vlgmr.msra.gmra.mrb[8].mxu0 %vm356_vm3, %v446_v63  ;;  %v1318_v3 = vpop.eup %1317  ;;  %v444_v4 = vmul.f32 %v1316_v0, %v1302_v36 }
 0x52e   : > { %1175 = vmatpush3.bf16.msra.mxu0 %v521_v2  ;;  %1176 = vmatprep.mubr.msk.bf16.mxu0 %vm356_vm3, %v447_v1  ;;  %v443_v5 = vmul.f32 %v1318_v3, %v1729_v30 }
 0x52f   :  { %1204 = vmatprep.subr.bf16.mxu0 (%p125_p6), %v1534_v53 }
 0x530   : > { %v448_v6 = vpack.c.bf16 %v444_v4, %v443_v5 }
 0x535   : > { %1177 = vmatmul.mubr.msk.bf16.vlgmr.msra.gmra.mrb[12].mxu0 %vm356_vm3, %v448_v6 }
 0x536   :  { %1205 = vmatpush3.bf16.msra.mxu0 (%p125_p6), %v1323_v52  ;;  %1208 = vmatprep.mubr.msk.bf16.mxu0 (%p125_p6), %vm1535_vm5, %v1534_v53 }
 0x537   :  { %1206 = vmatprep.subr.bf16.mxu0 (%p125_p6), %v1534_v53 }
 0x53a   :  { %1207 = vmatpush3.bf16.msra.mxu0 (%p125_p6), %v1324_v54 }
 0x600   : > { %v1172_v8 = vpop.f32.mrb[8].mxu0 }
 0x601   : > { %v496_v9 = vpop.f32.mrb[9].mxu0 }
 0x602   : > { %v1173_v10 = vpop.f32.mrb[10].mxu0 }
 0x603   : > { %v499_v11 = vpop.f32.mrb[11].mxu0 }
 0x608   : > { %v1178_v12 = vpop.f32.mrb[12].mxu0 }
 0x609   : > { %v685_v13 = vpack.c.bf16 %v1178_v12, %v1172_v8  ;;  %v557_v14 = vpop.f32.mrb[13].mxu0 }
 0x60a   : > { %v572_v15 = vpack.c.bf16 %v557_v14, %v496_v9  ;;  %v1179_v16 = vpop.f32.mrb[14].mxu0  ;;  %v1326_v14 = vld [vmem:[%s1815_s9 + $0x8] ss:$0 sps:$4 sm:$0xff] (%p125_p6)  }
 0x60b   : > { %v744_v18 = vpack.c.bf16 %v1179_v16, %v1173_v10  ;;  %v560_v19 = vpop.f32.mrb[15].mxu0  ;;  %v1114_v16 = vld [vmem:[#allocation11] ss:$0 sm:$0xff] (%p125_p6) }
 0x60c   : > { %v578_v21 = vpack.c.bf16 %v560_v19, %v499_v11 }
 0x60e   : > { %1183 = vmatmul.mubr.msk.bf16.vlgmr.msra.gmra.mrb[0].mxu1 %vm247_vm2, %v578_v21 }
 0x60f   : > { %1187 = vmatpush3.bf16.msra.mxu1 %v1280_v20  ;;  %1188 = vmatprep.mubr.msk.bf16.mxu1 %vm1532_vm1, %v1531_v17 }
 0x610   : > { %1192 = vmatprep.subr.bf16.mxu1 %v1531_v17 }
 0x61a   : > { %1189 = vmatmul.mubr.msk.bf16.vlgmr.msra.gmra.mrb[0].mxu1 %vm247_vm2, %v572_v15  ;;  %v985_v15 = vsel (%p125_p6), %vm458_vm4, %v1326_v14, 0 }
 0x61b   : > { %1193 = vmatpush3.bf16.msra.mxu1 %v1281_v22  ;;  %1194 = vmatprep.mubr.msk.bf16.mxu1 %vm1532_vm1, %v1531_v17 }
 0x61c   : > { %1198 = vmatprep.subr.bf16.mxu1 %v1531_v17 }
 0x626   : > { %1195 = vmatmul.mubr.msk.bf16.vlgmr.msra.gmra.mrb[0].mxu1 %vm247_vm2, %v685_v13  ;;  %v1325_v13 = vld [vmem:[%s1815_s9] sm:$0xff] (%p125_p6)  }
 0x627   : > { %1199 = vmatpush3.bf16.msra.mxu1 %v1282_v23  ;;  %1200 = vmatprep.mubr.msk.bf16.mxu1 %vm1532_vm1, %v1531_v17 }
 0x628   :  { %1212 = vmatprep.subr.bf16.mxu1 (%p125_p6), %v1534_v53 }
 0x632   : > { %1201 = vmatmul.mubr.msk.bf16.vlgmr.msra.gmra.mrb[0].mxu1 %vm247_vm2, %v744_v18 }
 0x633   :  { %1216 = vmatprep.mubr.msk.bf16.mxu1 (%p125_p6), %vm1535_vm5, %v1534_v53  ;;  %1213 = vmatpush3.bf16.msra.mxu1 (%p125_p6), %v1325_v13 }
 0x634   :  { %1214 = vmatprep.subr.bf16.mxu1 (%p125_p6), %v1534_v53 }
 0x637   :  { %1215 = vmatpush3.bf16.msra.mxu1 (%p125_p6), %v985_v15 }
 0x705   : > { %v794_v24 = vpop.f32.mrb[0].mxu1 }
 0x706   : > { %v1202_v25 = vpop.f32.mrb[1].mxu1  ;;  %v805_v26 = vsel %vm133_vm0, %v794_v24, 0.0 }
 0x707   : > { %806 = vadd.xlane.f32.xlu1 %v805_v26  ;;  %v797_v27 = vpop.f32.mrb[2].mxu1 }
 0x708   : > { %v1203_v28 = vpop.f32.mrb[3].mxu1  ;;  %v808_v29 = vsel %vm133_vm0, %v797_v27, 0.0 }
 0x709   : > { %809 = vadd.xlane.f32.xlu0 %v808_v29 }
 0x794   : > { %v807_v30 = vpop.xlane.xlu1 %806 }
 0x795   : > { %v811_v31 = vmul.f32 0.03125, %v807_v30 }
 0x796   : > { %v810_v32 = vpop.xlane.xlu0 %809 }
 0x797   : > { %v813_v33 = vsub.f32 %v794_v24, %v811_v31  ;;  %v812_v34 = vmul.f32 0.03125, %v810_v32 }
 0x799   : > { %v814_v36 = vsub.f32 %v797_v27, %v812_v34  ;;  %v815_v17 = vmul.f32 %v813_v33, %v813_v33 }
 0x79b   : > { %v817_v38 = vsel %vm133_vm0, %v815_v17, 0.0  ;;  %v816_v39 = vmul.f32 %v814_v36, %v814_v36 }
 0x79c   : > { %818 = vadd.xlane.f32.xlu0 %v817_v38 }
 0x79d   : > { %v820_v40 = vsel %vm133_vm0, %v816_v39, 0.0 }
 0x79e   : > { %821 = vadd.xlane.f32.xlu1 %v820_v40 }
 0x829   : > { %v819_v41 = vpop.xlane.xlu0 %818 }
 0x82a   : > { %v823_v42 = vmul.f32 0.03125, %v819_v41 }
 0x82b   : > { %v822_v43 = vpop.xlane.xlu1 %821 }
 0x82c   : > { %v825_v44 = vadd.f32 1e-05, %v823_v42  ;;  %v824_v45 = vmul.f32 0.03125, %v822_v43 }
 0x82e   : > { %1319 = vrsqrt.f32 %v825_v44  ;;  %v826_v46 = vadd.f32 1e-05, %v824_v45 }
 0x830   : > { %1321 = vrsqrt.f32 %v826_v46 }
 0x838   : > { %v1320_v47 = vpop.eup %1319 }
 0x839   : > { %v829_v49 = vmul.f32 %v1320_v47, %v813_v33  ;;  %127 = sbr.rel (!%p125_p6) target bundleno = 114 (0x72), region = 103 }
 0x83a   : > { %v1322_v50 = vpop.eup %1321 }
 0x83b   : > { %v837_v35 = vmul.f32 %v1113_v48, %v829_v49   ;;  %v830_v37 = vmul.f32 %v1322_v50, %v814_v36  ;;  %v1118_v50 = vld [vmem:[%s1816_s10] ss:$0 sm:$0xff] (%p125_p6) }
 0x83d   : > { %v838_v51 = vmul.f32 %v1113_v48, %v830_v37   ;;  %v1819_v3 = vmov %v837_v35  ;;  %v840_v55 = vsel (%p125_p6), %vm133_vm0, %v837_v35, 0.0 }
 0x83e   :  { %v841_v57 = vrot.slane (%p125_p6), %v840_v55, 4 }
 0x83f   : > { %v1818_v4 = vmov %v838_v51  ;;  %v847_v56 = vsel (%p125_p6), %vm133_vm0, %v838_v51, 0.0 }
 0x840   :  { %v848_v58 = vrot.slane %v847_v56, 4  ;;  %v842_v59 = vadd.f32 %v841_v57, %v840_v55 }
 0x842   :  { %v849_v60 = vadd.f32 %v848_v58, %v847_v56  ;;  %v843_v61 = vrot.slane %v842_v59, 2 }
 0x844   :  { %v850_v62 = vrot.slane %v849_v60, 2  ;;  %v844_v63 = vadd.f32 %v843_v61, %v842_v59 }
 0x846   :  { %v851_v0 = vadd.f32 %v850_v62, %v849_v60  ;;  %v845_v1 = vrot.slane %v844_v63, 1 }
 0x848   :  { %v852_v2 = vrot.slane %v851_v0, 1  ;;  %v846_v3 = vadd.f32 %v845_v1, %v844_v63 }
 0x84a   :  { %v853_v4 = vadd.f32 %v852_v2, %v851_v0  ;;  %v855_v5 = vmul.f32 0.125, %v846_v3 }
 0x84c   :  { %v856_v6 = vmul.f32 0.125, %v853_v4  ;;  %v857_v7 = vpack.c.bf16 %v855_v5, %v855_v5 }
 0x84e   :  { %v858_v8 = vpack.c.bf16 %v856_v6, %v856_v6  ;;  %v872_v9 = vunpack.c.l.b16 %v857_v7 }
 0x850   :  { %v873_v10 = vunpack.c.l.b16 %v858_v8 }
 0x852   :  { %v875_v11 = vsel %vm874_vm6, %v873_v10, %v872_v9 }
 0x853   :  { %v876_v12 = vpack.c.b16 %v875_v11, %v875_v11 }
 0x855   :  { %1209 = vmatmul.mubr.msk.bf16.vlgmr.msra.gmra.mrb[0].mxu0 %vm133_vm0, %v876_v12 }
 0x928   :  { %v926_v18 = vpop.f32.mrb[0].mxu0 }
 0x929   :  { %v927_v19 = vadd.f32 %v1114_v16, %v926_v18  ;;  %v1210_v20 = vpop.f32.mrb[1].mxu0 }
 0x92a   :  { %v929_v21 = vpop.f32.mrb[2].mxu0 }
 0x92b   :  { %v933_v22 = vmul.f32 0.70710677, %v927_v19  ;;  %v1211_v23 = vpop.f32.mrb[3].mxu0  ;;  %v932_v46 = vmul.f32 0.5, %v927_v19 }
 0x92d   :  { %v934_v24 = vand.u32 2147483647, %v933_v22  ;;  %vm954_vm7 = vcmp.ge.f32.partialorder %v933_v22, 0.0 }
 0x92f   :  { %v935_v25 = vmul.f32 0.3275911, %v934_v24  ;;  %v948_v27 = vsub.f32 0.0, %v934_v24 }
 0x931   :  { %v936_v26 = vadd.f32 1.0, %v935_v25  ;;  %v949_v29 = vmul.f32 %v948_v27, %v934_v24 }
 0x933   :  { %1327 = vrcp.f32 %v936_v26  ;;  %v950_v32 = vmul.f32 1.442695, %v949_v29 }
 0x935   :  { %1329 = vpow2.f32 %v950_v32 }
 0x93d   :  { %v1328_v28 = vpop.eup %1327 }
 0x93e   :  { %v939_v30 = vmul.f32 1.0614054, %v1328_v28 }
 0x93f   :  { %v1330_v41 = vpop.eup %1329 }
 0x940   :  { %v940_v31 = vadd.f32 -1.4531521, %v939_v30 }
 0x942   :  { %v941_v33 = vmul.f32 %v1328_v28, %v940_v31 }
 0x944   :  { %v942_v34 = vadd.f32 1.4214138, %v941_v33 }
 0x946   :  { %v943_v36 = vmul.f32 %v1328_v28, %v942_v34 }
 0x948   :  { %v944_v17 = vadd.f32 -0.28449672, %v943_v36 }
 0x94a   :  { %v945_v38 = vmul.f32 %v1328_v28, %v944_v17 }
 0x94c   :  { %v946_v39 = vadd.f32 0.2548296, %v945_v38 }
 0x94e   :  { %v947_v40 = vmul.f32 %v1328_v28, %v946_v39 }
 0x950   :  { %v952_v42 = vmul.f32 %v1330_v41, %v947_v40 }
 0x952   :  { %v953_v43 = vsub.f32 1.0, %v952_v42 }
 0x954   :  { %v955_v44 = vsub.f32 0.0, %v953_v43 }
 0x956   :  { %v956_v45 = vsel %vm954_vm7, %v953_v43, %v955_v44 }
 0x957   :  { %v957_v47 = vadd.f32 1.0, %v956_v45 }
 0x959   :  { %v958_v48 = vmul.f32 %v957_v47, %v932_v46 }
 0x95b   :  { %v959_v49 = vpack.c.bf16 %v958_v48, %v958_v48 }
 0x95d   :  { %1217 = vmatmul.mubr.msk.bf16.vlgmr.msra.gmra.mrb[0].mxu1 %vm979_vm8, %v959_v49 }
 0xa30   :  { %v1021_v35 = vpop.f32.mrb[0].mxu1 }
 0xa31   :  { %v1022_v37 = vadd.f32 %v1118_v50, %v1021_v35  ;;  %v1218_v51 = vpop.f32.mrb[1].mxu1 }
 0xa32   :  { %v1024_v52 = vpop.f32.mrb[2].mxu1 }
 0xa33   :  { %1027 = vst [vmem:[#allocation13] sm:$0x3] %v1022_v37  ;;  %v1219_v53 = vpop.f32.mrb[3].mxu1 }
 0xa34   :  { %1474 = shalt.err (!%p1471_p11)
}
 0xa35   :  { %s1475_s10 = scalar_lea.hbm %s1817_s11, 32 }
 0xa36   :  { %p1476_p12 = scmp.ne.s32.totalorder %s1817_s11, %s1475_s10  ;;  %p1479_p13 = scmp.lt.u32.totalorder %s1475_s10, %s1817_s11 }
 0xa38   :  { %p1481_p0 = pnand %p1479_p13, %p1476_p12 }
 0xa3a   :  { %1484 = shalt.err (!%p1481_p0)
}
 0xa3b   :  { %1037 = dma.vmem_to_hbm [thread:$0]  %s1035_s12, 32, %s1817_s11, [#allocation4]  }
 0xa3c   :  { %1505 = dma.done.wait [#allocation4], 32  }
 0xa3d   :  { %1506 = vsyncadd [#allocation4], 4294967264 }
 0xa3e   :  { %1041 = vsyncpa [#allocation3], 1 }
 0xa3f   :  { %1042 = vsyncpa [#allocation6], 1 }
 0xa40   :  { %1043 = vsyncpa [#allocation9], 1 }
 0xa41   :  { %1044 = vsyncpa [#allocation12], 1 }
 0xa42   :  { %1045 = vsyncpa [#allocation4], 1 }

</bundles_post_ra>
